<compile_context>
chip_gen: v5e
topology: v5e:2x2
jax: 0.10.0
libtpu: 0.0.40
codegen_flags: <defaults>
</compile_context>

<pallas_src>
import jax
import jax.numpy as jnp
from jax.experimental import pallas as pl
from jax.experimental.pallas import tpu as pltpu

HIDDEN = 128
LANE = 128


def _round_up(x, m):
    return ((x + m - 1) // m) * m


def dqn_kernel(x_ref, w1_ref, b1_ref, w2_ref, b2_ref, w3_ref, b3_ref, o_ref):
    # x_ref: [TB, n_obs] bf16; w*: bf16 [in,out]; b*: f32 [1,out]; o: [TB, 128] f32
    x = x_ref[...]

    h1 = jnp.dot(x, w1_ref[...], preferred_element_type=jnp.float32) + b1_ref[...]
    h1 = jnp.maximum(h1, 0.0)                              # f32 ReLU (VPU)

    h2 = jnp.dot(h1.astype(w2_ref.dtype), w2_ref[...],
                 preferred_element_type=jnp.float32) + b2_ref[...]
    h2 = jnp.maximum(h2, 0.0)

    out = jnp.dot(h2.astype(w3_ref.dtype), w3_ref[...],
                  preferred_element_type=jnp.float32) + b3_ref[...]
    o_ref[...] = out.astype(o_ref.dtype)                   # lane-dense store


def pack_params(params_f32):
    """f32 [in,out]/[1,out] params -> kernel params: bf16 weights, f32 biases,
    last layer zero-padded to a 128-lane-dense output slab."""
    w1, b1, w2, b2, w3, b3 = params_f32
    n_actions = w3.shape[1]
    out_pad = _round_up(n_actions, LANE)
    w3p = jnp.pad(w3, ((0, 0), (0, out_pad - n_actions)))
    b3p = jnp.pad(b3, ((0, 0), (0, out_pad - n_actions)))
    return (w1.astype(jnp.bfloat16), b1,
            w2.astype(jnp.bfloat16), b2,
            w3p.astype(jnp.bfloat16), b3p)


def dqn_forward(x, packed_params, n_actions, *, block_batch=256):
    """x: [batch, n_observations] f32. Returns [batch, n_actions] f32."""
    w1, b1, w2, b2, w3p, b3p = packed_params
    batch, n_obs = x.shape
    out_pad = w3p.shape[1]

    # Batch tile: multiple of 128 for large batches (MXU row width on v5e),
    # otherwise round the small batch up to the bf16 sublane tile (16).
    tb = block_batch if batch >= block_batch else _round_up(batch, 16)
    padded_batch = _round_up(batch, tb)

    xp = x if padded_batch == batch else jnp.pad(x, ((0, padded_batch - batch), (0, 0)))
    xp = xp.astype(jnp.bfloat16)

    grid = (padded_batch // tb,)

    # Weights / biases: full-shape blocks with a constant block index => they
    # stay resident in VMEM across all grid iterations.
    resident = lambda a: pl.BlockSpec(a.shape, lambda i: (0,) * a.ndim)

    flops = 2 * padded_batch * (n_obs * HIDDEN + HIDDEN * HIDDEN + HIDDEN * out_pad)
    bytes_accessed = (
        xp.size * xp.dtype.itemsize
        + sum(int(p.size) * p.dtype.itemsize for p in packed_params)
        + padded_batch * out_pad * 4
    )

    out = pl.pallas_call(
        dqn_kernel,
        out_shape=jax.ShapeDtypeStruct((padded_batch, out_pad), jnp.float32),
        grid_spec=pltpu.PrefetchScalarGridSpec(
            num_scalar_prefetch=0,
            grid=grid,
            in_specs=[
                pl.BlockSpec((tb, n_obs), lambda i: (i, 0)),   # x: tiled on batch
                resident(w1), resident(b1),
                resident(w2), resident(b2),
                resident(w3p), resident(b3p),
            ],
            out_specs=pl.BlockSpec((tb, out_pad), lambda i: (i, 0)),
        ),
        compiler_params=pltpu.CompilerParams(
            dimension_semantics=("parallel",)),
        cost_estimate=pl.CostEstimate(
            flops=flops, transcendentals=0, bytes_accessed=bytes_accessed),
    )(xp, w1, b1, w2, b2, w3p, b3p)

    return out[:batch, :n_actions]


def init_params(key, n_observations, n_actions, hidden=HIDDEN):
    """Deterministic init mimicking nn.Linear's U(-1/sqrt(fan_in), 1/sqrt(fan_in)).
    Weights stored [in, out] so y = x @ W + b == PyTorch's x @ W.T + b."""
    ks = jax.random.split(key, 6)

    def linear(kw, kb, fan_in, fan_out):
        bound = 1.0 / jnp.sqrt(fan_in)
        w = jax.random.uniform(kw, (fan_in, fan_out), jnp.float32, -bound, bound)
        b = jax.random.uniform(kb, (1, fan_out), jnp.float32, -bound, bound)
        return w, b

    w1, b1 = linear(ks[0], ks[1], n_observations, hidden)
    w2, b2 = linear(ks[2], ks[3], hidden, hidden)
    w3, b3 = linear(ks[4], ks[5], hidden, n_actions)
    return (w1, b1, w2, b2, w3, b3)


def _reference(x, params_f32):
    w1, b1, w2, b2, w3, b3 = params_f32
    h = jnp.maximum(x @ w1 + b1, 0.0)
    h = jnp.maximum(h @ w2 + b2, 0.0)
    return h @ w3 + b3


if __name__ == "__main__":
    key = jax.random.PRNGKey(0)
    k_param, k_x, k_x2 = jax.random.split(key, 3)

    n_observations = 8
    n_actions = 4

    params = init_params(k_param, n_observations, n_actions)
    packed = pack_params(params)

    # Small batch (original spec shapes): single grid step, padded to 16 rows.
    batch = 2
    x = jax.random.normal(k_x, (batch, n_observations), jnp.float32)
    out = dqn_forward(x, packed, n_actions)
    jax.block_until_ready(out)
    assert out.shape == (batch, n_actions)
    ref = _reference(x, params)
    # bf16 matmul inputs with f32 accumulation -> loose tolerance.
    assert jnp.allclose(out, ref, atol=5e-2, rtol=5e-2), (
        float(jnp.max(jnp.abs(out - ref))))

    # Larger (replay-minibatch-style) batch exercising the multi-tile grid,
    # batch padding, and resident-weight pipelining.
    batch2 = 384  # pads to 512 = 2 grid steps of 256
    x2 = jax.random.normal(k_x2, (batch2, n_observations), jnp.float32)
    out2 = dqn_forward(x2, packed, n_actions)
    jax.block_until_ready(out2)
    assert out2.shape == (batch2, n_actions)
    ref2 = _reference(x2, params)
    assert jnp.allclose(out2, ref2, atol=5e-2, rtol=5e-2), (
        float(jnp.max(jnp.abs(out2 - ref2))))

    print("KERNEL_OK")
</pallas_src>

<mosaic_0001>
module attributes {stable_mosaic.version = 11 : i64} {
  func.func @dqn_kernel(%arg0: i32, %arg1: memref<16x8xbf16, #tpu.memory_space<vmem>>, %arg2: memref<8x128xbf16, #tpu.memory_space<vmem>>, %arg3: memref<1x128xf32, #tpu.memory_space<vmem>>, %arg4: memref<128x128xbf16, #tpu.memory_space<vmem>>, %arg5: memref<1x128xf32, #tpu.memory_space<vmem>>, %arg6: memref<128x128xbf16, #tpu.memory_space<vmem>>, %arg7: memref<1x128xf32, #tpu.memory_space<vmem>>, %arg8: memref<16x128xf32, #tpu.memory_space<vmem>>) attributes {dimension_semantics = [#tpu.dimension_semantics<parallel>], iteration_bounds = array<i64: 1>, scalar_prefetch = 0 : i64, scratch_operands = 0 : i64, tpu.core_type = #tpu.core_type<tc>, window_params = [{transform_indices = @transform_0, window_bounds = array<i64: 16, 8>}, {pipeline_mode = #tpu.pipeline_mode<synchronous>, transform_indices = @transform_1, window_bounds = array<i64: 8, 128>}, {pipeline_mode = #tpu.pipeline_mode<synchronous>, transform_indices = @transform_2, window_bounds = array<i64: 1, 128>}, {pipeline_mode = #tpu.pipeline_mode<synchronous>, transform_indices = @transform_3, window_bounds = array<i64: 128, 128>}, {pipeline_mode = #tpu.pipeline_mode<synchronous>, transform_indices = @transform_4, window_bounds = array<i64: 1, 128>}, {pipeline_mode = #tpu.pipeline_mode<synchronous>, transform_indices = @transform_5, window_bounds = array<i64: 128, 128>}, {pipeline_mode = #tpu.pipeline_mode<synchronous>, transform_indices = @transform_6, window_bounds = array<i64: 1, 128>}, {transform_indices = @transform_7, window_bounds = array<i64: 16, 128>}]} {
    %c0 = arith.constant 0 : index
    %c0_0 = arith.constant 0 : index
    %0 = vector.load %arg1[%c0, %c0_0] : memref<16x8xbf16, #tpu.memory_space<vmem>>, vector<16x8xbf16>
    %c0_1 = arith.constant 0 : index
    %c0_2 = arith.constant 0 : index
    %1 = vector.load %arg2[%c0_1, %c0_2] : memref<8x128xbf16, #tpu.memory_space<vmem>>, vector<8x128xbf16>
    %cst = arith.constant dense<0.000000e+00> : vector<16x128xf32>
    %2 = tpu.matmul %0, %1, %cst {dimension_numbers = #tpu.dot_dimension_numbers<[1], [0], [0], [1], [0, 0, 1, 1], [], []>} : vector<16x8xbf16>, vector<8x128xbf16>, vector<16x128xf32> -> vector<16x128xf32>
    %c0_3 = arith.constant 0 : index
    %c0_4 = arith.constant 0 : index
    %3 = vector.load %arg3[%c0_3, %c0_4] : memref<1x128xf32, #tpu.memory_space<vmem>>, vector<1x128xf32>
    %4 = vector.broadcast %3 : vector<1x128xf32> to vector<16x128xf32>
    %5 = arith.addf %2, %4 : vector<16x128xf32>
    %cst_5 = arith.constant 0.000000e+00 : f32
    %6 = vector.broadcast %cst_5 : f32 to vector<16x128xf32>
    %7 = arith.maximumf %5, %6 : vector<16x128xf32>
    %8 = arith.truncf %7 : vector<16x128xf32> to vector<16x128xbf16>
    %c0_6 = arith.constant 0 : index
    %c0_7 = arith.constant 0 : index
    %9 = vector.load %arg4[%c0_6, %c0_7] : memref<128x128xbf16, #tpu.memory_space<vmem>>, vector<128x128xbf16>
    %cst_8 = arith.constant dense<0.000000e+00> : vector<16x128xf32>
    %10 = tpu.matmul %8, %9, %cst_8 {dimension_numbers = #tpu.dot_dimension_numbers<[1], [0], [0], [1], [0, 0, 1, 1], [], []>} : vector<16x128xbf16>, vector<128x128xbf16>, vector<16x128xf32> -> vector<16x128xf32>
    %c0_9 = arith.constant 0 : index
    %c0_10 = arith.constant 0 : index
    %11 = vector.load %arg5[%c0_9, %c0_10] : memref<1x128xf32, #tpu.memory_space<vmem>>, vector<1x128xf32>
    %12 = vector.broadcast %11 : vector<1x128xf32> to vector<16x128xf32>
    %13 = arith.addf %10, %12 : vector<16x128xf32>
    %cst_11 = arith.constant 0.000000e+00 : f32
    %14 = vector.broadcast %cst_11 : f32 to vector<16x128xf32>
    %15 = arith.maximumf %13, %14 : vector<16x128xf32>
    %16 = arith.truncf %15 : vector<16x128xf32> to vector<16x128xbf16>
    %c0_12 = arith.constant 0 : index
    %c0_13 = arith.constant 0 : index
    %17 = vector.load %arg6[%c0_12, %c0_13] : memref<128x128xbf16, #tpu.memory_space<vmem>>, vector<128x128xbf16>
    %cst_14 = arith.constant dense<0.000000e+00> : vector<16x128xf32>
    %18 = tpu.matmul %16, %17, %cst_14 {dimension_numbers = #tpu.dot_dimension_numbers<[1], [0], [0], [1], [0, 0, 1, 1], [], []>} : vector<16x128xbf16>, vector<128x128xbf16>, vector<16x128xf32> -> vector<16x128xf32>
    %c0_15 = arith.constant 0 : index
    %c0_16 = arith.constant 0 : index
    %19 = vector.load %arg7[%c0_15, %c0_16] : memref<1x128xf32, #tpu.memory_space<vmem>>, vector<1x128xf32>
    %20 = vector.broadcast %19 : vector<1x128xf32> to vector<16x128xf32>
    %21 = arith.addf %18, %20 : vector<16x128xf32>
    %c0_17 = arith.constant 0 : index
    %c0_18 = arith.constant 0 : index
    %22 = vector.load %arg8[%c0_17, %c0_18] : memref<16x128xf32, #tpu.memory_space<vmem>>, vector<16x128xf32>
    tpu.vector_store %arg8[%c0_17, %c0_18], %21 {strides = array<i32>} : memref<16x128xf32, #tpu.memory_space<vmem>>, vector<16x128xf32>,
    return
  }
  func.func @transform_0(%arg0: i32) -> (i32, i32) {
    %c0_i32 = arith.constant 0 : i32
    %c0_i32_0 = arith.constant 0 : i32
    return %arg0, %c0_i32 : i32, i32
  }
  func.func @transform_1(%arg0: i32) -> (i32, i32) {
    %c0_i32 = arith.constant 0 : i32
    %c0_i32_0 = arith.constant 0 : i32
    %c0_i32_1 = arith.constant 0 : i32
    return %c0_i32, %c0_i32_0 : i32, i32
  }
  func.func @transform_2(%arg0: i32) -> (i32, i32) {
    %c0_i32 = arith.constant 0 : i32
    %c0_i32_0 = arith.constant 0 : i32
    %c0_i32_1 = arith.constant 0 : i32
    return %c0_i32, %c0_i32_0 : i32, i32
  }
  func.func @transform_3(%arg0: i32) -> (i32, i32) {
    %c0_i32 = arith.constant 0 : i32
    %c0_i32_0 = arith.constant 0 : i32
    %c0_i32_1 = arith.constant 0 : i32
    return %c0_i32, %c0_i32_0 : i32, i32
  }
  func.func @transform_4(%arg0: i32) -> (i32, i32) {
    %c0_i32 = arith.constant 0 : i32
    %c0_i32_0 = arith.constant 0 : i32
    %c0_i32_1 = arith.constant 0 : i32
    return %c0_i32, %c0_i32_0 : i32, i32
  }
  func.func @transform_5(%arg0: i32) -> (i32, i32) {
    %c0_i32 = arith.constant 0 : i32
    %c0_i32_0 = arith.constant 0 : i32
    %c0_i32_1 = arith.constant 0 : i32
    return %c0_i32, %c0_i32_0 : i32, i32
  }
  func.func @transform_6(%arg0: i32) -> (i32, i32) {
    %c0_i32 = arith.constant 0 : i32
    %c0_i32_0 = arith.constant 0 : i32
    %c0_i32_1 = arith.constant 0 : i32
    return %c0_i32, %c0_i32_0 : i32, i32
  }
  func.func @transform_7(%arg0: i32) -> (i32, i32) {
    %c0_i32 = arith.constant 0 : i32
    %c0_i32_0 = arith.constant 0 : i32
    return %arg0, %c0_i32 : i32, i32
  }
}

</mosaic_0001>

<bundles_post_ra>
// kernel: tpu_custom_call.1
= control target key start
LH: loop header
LB: loop body
LE: loop exit
PB: predicated region body
PF: predicated region fallthrough
CT: control target
= control target key end

     0   :  { %12 = vsyncpa [#allocation3], 0  ;;  %s531_s0 = inlined_call_operand.vmem [shape: bf16[16,8], index: 0, kind: input, shape index: {}]   ;;  %s532_s1 = inlined_call_operand.vmem [shape: bf16[8,128], index: 1, kind: input, shape index: {}]   ;;  %s533_s2 = inlined_call_operand.vmem [shape: f32[1,128], index: 2, kind: input, shape index: {}]   ;;  %s534_s3 = inlined_call_operand.hbm [shape: bf16[128,128], index: 3, kind: input, shape index: {}]   ;;  %s535_s4 = inlined_call_operand.vmem [shape: f32[1,128], index: 4, kind: input, shape index: {}]   ;;  %s536_s5 = inlined_call_operand.hbm [shape: bf16[128,128], index: 5, kind: input, shape index: {}]   ;;  %s537_s6 = inlined_call_operand.vmem [shape: f32[1,128], index: 6, kind: input, shape index: {}]   ;;  %s538_s7 = inlined_call_operand.hbm [shape: f32[16,128], index: 7, kind: output, shape index: {}]  }
   0x1   :  { %13 = vsyncpa [#allocation6], 0 }
   0x2   :  { %14 = vsyncpa [#allocation4], 0  ;;  %s25_s26 = sshll.u32 %s534_s3, 4  ;;  %s460_s27 = smov [#allocation2]   ;;  %s26_s26 = int_to_ptr.hbm [resolvable:$true] %s25_s26 }
   0x3   :  { %s27_s28 = sshll.u32 %s460_s27, 4  ;;  %s40_s8 = sshll.u32 %s536_s5, 4  ;;  %s28_s28 = int_to_ptr.vmem [resolvable:$true] %s27_s28  ;;  %s41_s8 = int_to_ptr.hbm [resolvable:$true] %s40_s8 }
   0x4   :  { %s461_s9 = smov 64   ;;  %s462_s10 = smov 4  }
   0x5   :  { %33 = dma.hbm_to_vmem [thread:$0]  %s26_s26, 1024, %s28_s28, [#allocation3], %s461_s9, %s461_s9, %s462_s10  }
   0x6   :  { %s463_s11 = smov [#allocation5]  }
   0x7   :  { %s42_s12 = sshll.u32 %s463_s11, 4  ;;  %s43_s12 = int_to_ptr.vmem [resolvable:$true] %s42_s12 }
   0x8   :  { %48 = dma.hbm_to_vmem [thread:$0]  %s41_s8, 1024, %s43_s12, [#allocation6], %s461_s9, %s461_s9, %s462_s10  }
   0x9   :  { %454 = dma.done.wait [#allocation3], 1024  }
   0xa   :  { %455 = vsyncadd [#allocation3], 4294966272 }
   0xb   :  { %456 = dma.done.wait [#allocation6], 1024  }
   0xc   :  { %457 = vsyncadd [#allocation6], 4294966272  ;;  %vm76_vm0 = vcmask 1043456   ;;  %v62_v0 = vld [vmem:[%s532_s1] sm:$0xf]  ;;  %v363_v1 = vld [vmem:[#allocation2 + $0x38] sm:$0xff] }
   0xd   :  { %v78_v2 = vsel %vm76_vm0, %v62_v0, 0  ;;  %v355_v3 = vld [vmem:[%s531_s0] sm:$0xff]  ;;  %vm72_vm1 = vcmask 64512   ;;  %165 = vmatpush.bf16.msra.mxu1 %v363_v1  ;;  %v362_v4 = vld [vmem:[#allocation2 + $0x30] sm:$0xff]  ;;  %v361_v5 = vld [vmem:[#allocation2 + $0x28] sm:$0xff]  ;;  %s464_s18 = smov [#allocation7]  }
   0xe   :  { %87 = vmatpush.bf16.msra.mxu0 %v78_v2  ;;  %v360_v6 = vld [vmem:[#allocation2 + $0x20] sm:$0xff]  ;;  %v359_v7 = vld [vmem:[#allocation2 + $0x18] sm:$0xff]  ;;  %v358_v8 = vld [vmem:[#allocation2 + $0x10] sm:$0xff]  ;;  %s270_s19 = sshll.u32 %s464_s18, 4  ;;  %s465_s22 = smov 128   ;;  %s271_s19 = int_to_ptr.vmem [resolvable:$true] %s270_s19 }
   0xf   :  { %v357_v9 = vld [vmem:[#allocation2 + $0x8] sm:$0xff]  ;;  %v356_v10 = vld [vmem:[#allocation2] sm:$0xff]  ;;  %v371_v11 = vld [vmem:[#allocation5 + $0x38] sm:$0xff]  ;;  %s466_s23 = smov 8  }
  0x10   :  { %250 = vmatpush.bf16.msra.mxu2 %v371_v11  ;;  %v370_v12 = vld [vmem:[#allocation5 + $0x30] sm:$0xff]  ;;  %v369_v13 = vld [vmem:[#allocation5 + $0x28] sm:$0xff]  ;;  %v368_v14 = vld [vmem:[#allocation5 + $0x20] sm:$0xff] }
  0x11   :  { %290 = vmatmul.msk.bf16.vlgmr.msra.gmra.mxu0 %vm72_vm1, %v355_v3  ;;  %166 = vmatpush.bf16.msra.mxu1 %v362_v4  ;;  %v379_v16 = vld [vmem:[%s533_s2] ss:$0 sm:$0xff]  ;;  %v367_v23 = vld [vmem:[#allocation5 + $0x18] sm:$0xff]  ;;  %v366_v24 = vld [vmem:[#allocation5 + $0x10] sm:$0xff] }
  0x12   :  { %v365_v25 = vld [vmem:[#allocation5 + $0x8] sm:$0xff]  ;;  %v364_v26 = vld [vmem:[#allocation5] sm:$0xff] }
  0x13   :  { %v380_v28 = vld [vmem:[%s535_s4] ss:$0 sm:$0xff]  ;;  %s272_s4 = sshll.u32 %s538_s7, 4  ;;  %s273_s4 = int_to_ptr.hbm [resolvable:$true] %s272_s4 }
  0x14   :  { %251 = vmatpush.bf16.msra.mxu2 %v370_v12  ;;  %v381_v35 = vld [vmem:[%s537_s6] ss:$0 sm:$0xff] }
  0x15   :  { %167 = vmatpush.bf16.msra.mxu1 %v361_v5 }
  0x18   :  { %252 = vmatpush.bf16.msra.mxu2 %v369_v13 }
  0x19   :  { %168 = vmatpush.bf16.msra.mxu1 %v360_v6 }
  0x1c   :  { %253 = vmatpush.bf16.msra.mxu2 %v368_v14 }
  0x1d   :  { %169 = vmatpush.bf16.msra.mxu1 %v359_v7 }
  0x20   :  { %254 = vmatpush.bf16.msra.mxu2 %v367_v23 }
  0x21   :  { %170 = vmatpush.bf16.msra.mxu1 %v358_v8 }
  0x24   :  { %255 = vmatpush.bf16.msra.mxu2 %v366_v24 }
  0x25   :  { %171 = vmatpush.bf16.msra.mxu1 %v357_v9 }
  0x28   :  { %256 = vmatpush.bf16.msra.mxu2 %v365_v25 }
  0x29   :  { %172 = vmatpush.bf16.msra.mxu1 %v356_v10 }
  0x2c   :  { %257 = vmatpush.bf16.msra.mxu2 %v364_v26 }
  0x8e   :  { %v89_v15 = vpop.f32.mrf.mxu0 }
  0x8f   :  { %v90_v17 = vadd.f32 %v379_v16, %v89_v15 }
  0x91   :  { %v94_v20 = vmax.f32 %v90_v17, 0.0 }
  0x96   :  { %v91_v18 = vpop.f32.mrf.mxu0 }
  0x97   :  { %v92_v19 = vadd.f32 %v379_v16, %v91_v18 }
  0x99   :  { %v95_v21 = vmax.f32 %v92_v19, 0.0 }
  0x9b   :  { %v96_v22 = vpack.c.bf16 %v95_v21, %v94_v20 }
  0x9d   :  { %173 = vmatmul.bf16.vlgmr.msra.gmra.mxu1 %v96_v22 }
 0x11a   :  { %v174_v27 = vpop.f32.mrf.mxu1 }
 0x11b   :  { %v175_v29 = vadd.f32 %v380_v28, %v174_v27 }
 0x11d   :  { %v179_v32 = vmax.f32 %v175_v29, 0.0 }
 0x122   :  { %v176_v30 = vpop.f32.mrf.mxu1 }
 0x123   :  { %v177_v31 = vadd.f32 %v380_v28, %v176_v30 }
 0x125   :  { %v180_v33 = vmax.f32 %v177_v31, 0.0 }
 0x127   :  { %v181_v34 = vpack.c.bf16 %v180_v33, %v179_v32 }
 0x129   :  { %258 = vmatmul.bf16.vlgmr.msra.gmra.mxu2 %v181_v34 }
 0x1ac   :  { %v259_v36 = vpop.f32.mrf.mxu2 }
 0x1ad   :  { %v260_v37 = vadd.f32 %v381_v35, %v259_v36 }
 0x1af   :  { %264 = vst [vmem:[#allocation7] sm:$0xff] %v260_v37 }
 0x1b4   :  { %v261_v38 = vpop.f32.mrf.mxu2 }
 0x1b5   :  { %v262_v39 = vadd.f32 %v381_v35, %v261_v38 }
 0x1b7   :  { %265 = vst [vmem:[#allocation7 + $0x8] sm:$0xff] %v262_v39 }
 0x1b8   :  { %278 = dma.vmem_to_hbm [thread:$0]  %s271_s19, 256, %s273_s4, [#allocation4], %s465_s22, %s465_s22, %s466_s23  }
 0x1b9   :  { %458 = dma.done.wait [#allocation4], 256  }
 0x1ba   :  { %459 = vsyncadd [#allocation4], 4294967040 }
 0x1bb   :  { %283 = vsyncpa [#allocation3], 1 }
 0x1bc   :  { %284 = vsyncpa [#allocation6], 1 }
 0x1bd   :  { %285 = vsyncpa [#allocation4], 1 }

</bundles_post_ra>
